<compile_context>
chip_gen: v6e
topology: v6e:2x2x1
jax: 0.10.0
libtpu: 0.0.40
codegen_flags: <defaults>
</compile_context>

<pallas_src>
import math

import jax
import jax.numpy as jnp
from jax.experimental import pallas as pl
from jax.experimental.pallas import tpu as pltpu


# ----------------------------------------------------------------------------- kernel
def mlp_packed_kernel(x_ref, w1_ref, b1_ref, w2_ref, b2_ref, w3_ref, b3_ref, o_ref):
    # Cast activations to the weight dtype (bf16) in VMEM: MXU runs native bf16,
    # accumulation is f32 via preferred_element_type, biases are added in f32.
    x = x_ref[...].astype(w1_ref.dtype)

    h1 = jnp.dot(x, w1_ref[...], preferred_element_type=jnp.float32) + b1_ref[...]
    h1 = jnp.maximum(h1, 0.0).astype(w2_ref.dtype)

    h2 = jnp.dot(h1, w2_ref[...], preferred_element_type=jnp.float32) + b2_ref[...]
    h2 = jnp.maximum(h2, 0.0).astype(w3_ref.dtype)

    out = jnp.dot(h2, w3_ref[...], preferred_element_type=jnp.float32) + b3_ref[...]
    o_ref[...] = out.astype(o_ref.dtype)


# ----------------------------------------------------------------------------- helpers
def _round_up(n, m):
    return ((n + m - 1) // m) * m


def _cdiv(a, b):
    return (a + b - 1) // b


def _block_diag_tile(w, p):
    """(a, b) -> (p*a, p*b) block-diagonal with p copies of w (off-blocks are exact 0)."""
    if p == 1:
        return w
    a, b = w.shape
    eye = jnp.eye(p, dtype=w.dtype)
    return (eye[:, None, :, None] * w[None, :, None, :]).reshape(p * a, p * b)


# ----------------------------------------------------------------------------- packing
def pack_params(params, *, compute_dtype=jnp.bfloat16):
    """One-time packing of the weights/biases into the lane-dense block-diag layout."""
    F, H = params["w1"].shape
    O = params["w3"].shape[1]
    LANE = 128

    # Packing factor so P*F, P*H, P*O are all multiples of 128 (full MXU/vreg lanes).
    P = math.lcm(LANE // math.gcd(F, LANE),
                 LANE // math.gcd(H, LANE),
                 LANE // math.gcd(O, LANE))
    if P * max(F, H, O) > 4096:
        P = 1  # already-wide layers: packing would bloat weights; plain layout is fine.

    return dict(
        P=P, F=F, H=H, O=O,
        w1=_block_diag_tile(params["w1"], P).astype(compute_dtype),
        w2=_block_diag_tile(params["w2"], P).astype(compute_dtype),
        w3=_block_diag_tile(params["w3"], P).astype(compute_dtype),
        b1=jnp.tile(params["b1"], (1, P)).astype(jnp.float32),
        b2=jnp.tile(params["b2"], (1, P)).astype(jnp.float32),
        b3=jnp.tile(params["b3"], (1, P)).astype(jnp.float32),
    )


# ----------------------------------------------------------------------------- wrapper
def multi_classification_forward(x, packed, *, max_packed_rows=1024,
                                 vmem_tile_budget=16 * 1024 * 1024):
    """x: (B, in_features) float32.  packed: output of pack_params."""
    B, F = x.shape
    P, H, O = packed["P"], packed["H"], packed["O"]
    assert F == packed["F"], "input feature mismatch"
    SUB = 8

    # Pad only to a multiple of 8*P rows (needed for the packed reshape + sublane
    # alignment).  The grid handles a ragged last tile itself, so no pad-to-tile-size
    # full-array rewrite of x.
    align = SUB * P
    Ba = _round_up(B, align)
    if Ba != B:
        x = jnp.pad(x, ((0, Ba - B), (0, 0)))  # padded rows are discarded at the end

    rows_total = Ba // P                 # packed (lane-dense) rows; multiple of 8
    x_slab = x.reshape(rows_total, P * F)  # free row-major repack

    # ---- tile sizing: as big as the VMEM budget allows, capped at 1024 packed rows.
    w_item = jnp.dtype(packed["w1"].dtype).itemsize
    bytes_per_row = (2 * P * F * 4            # x double buffer (f32 DMA)
                     + 2 * P * O * 4          # out double buffer (f32)
                     + 2 * P * H * 4          # h1 / h2 f32 temporaries
                     + (P * F + 2 * P * H) * w_item)  # bf16 copies of x/h1/h2
    rows_per_tile = min(max_packed_rows, vmem_tile_budget // max(bytes_per_row, 1))
    rows_per_tile = max(SUB, (rows_per_tile // SUB) * SUB)
    rows_per_tile = min(rows_per_tile, rows_total)

    n_steps = _cdiv(rows_total, rows_per_tile)
    if n_steps > 1 and n_steps % 2 == 1:
        # Keep the grid length even so megacore sharding (2 TCs on v7x) stays balanced.
        rows_per_tile = max(SUB, _round_up(_cdiv(rows_total, n_steps + 1), SUB))
        n_steps = _cdiv(rows_total, rows_per_tile)

    w1p, b1p = packed["w1"], packed["b1"]
    w2p, b2p = packed["w2"], packed["b2"]
    w3p, b3p = packed["w3"], packed["b3"]

    # ---- advisory cost: executed (packed) flops and actual HBM traffic.
    flops = 2 * n_steps * rows_per_tile * ((P * F) * (P * H)
                                           + (P * H) * (P * H)
                                           + (P * H) * (P * O))
    bytes_accessed = (rows_total * P * F * 4 + rows_total * P * O * 4
                      + (w1p.size + w2p.size + w3p.size) * w_item
                      + (b1p.size + b2p.size + b3p.size) * 4)

    const = lambda i: (0, 0)  # weights/biases are grid-invariant residents

    out_slab = pl.pallas_call(
        mlp_packed_kernel,
        out_shape=jax.ShapeDtypeStruct((rows_total, P * O), jnp.float32),
        grid_spec=pltpu.PrefetchScalarGridSpec(
            num_scalar_prefetch=0,
            grid=(n_steps,),
            in_specs=[
                pl.BlockSpec((rows_per_tile, P * F), lambda i: (i, 0)),  # lane-dense x
                pl.BlockSpec((P * F, P * H), const),                     # w1 (packed)
                pl.BlockSpec((1, P * H), const),                         # b1
                pl.BlockSpec((P * H, P * H), const),                     # w2 (packed)
                pl.BlockSpec((1, P * H), const),                         # b2
                pl.BlockSpec((P * H, P * O), const),                     # w3 (packed)
                pl.BlockSpec((1, P * O), const),                         # b3
            ],
            out_specs=pl.BlockSpec((rows_per_tile, P * O), lambda i: (i, 0)),
        ),
        compiler_params=pltpu.CompilerParams(
            dimension_semantics=("parallel",),
            vmem_limit_bytes=32 * 1024 * 1024,
        ),
        cost_estimate=pl.CostEstimate(
            flops=flops, transcendentals=0, bytes_accessed=bytes_accessed),
    )(x_slab, w1p, b1p, w2p, b2p, w3p, b3p)

    out = out_slab.reshape(Ba, O)        # unpack; identity slice is elided when Ba == B
    return out if Ba == B else out[:B]


# ----------------------------------------------------------------------------- init / ref
def init_params(key, input_features, output_features, hidden_units=8):
    """Mimics PyTorch nn.Linear default init, with weights stored as (in, out)."""
    ks = jax.random.split(key, 6)

    def linear(kw, kb, fan_in, fan_out):
        bound = 1.0 / jnp.sqrt(fan_in)
        w = jax.random.uniform(kw, (fan_in, fan_out), jnp.float32, -bound, bound)
        b = jax.random.uniform(kb, (1, fan_out), jnp.float32, -bound, bound)
        return w, b

    w1, b1 = linear(ks[0], ks[1], input_features, hidden_units)
    w2, b2 = linear(ks[2], ks[3], hidden_units, hidden_units)
    w3, b3 = linear(ks[4], ks[5], hidden_units, output_features)
    return dict(w1=w1, b1=b1, w2=w2, b2=b2, w3=w3, b3=b3)


def reference_forward(x, p):
    h1 = jnp.maximum(x @ p["w1"] + p["b1"], 0.0)
    h2 = jnp.maximum(h1 @ p["w2"] + p["b2"], 0.0)
    return h2 @ p["w3"] + p["b3"]


if __name__ == "__main__":
    key = jax.random.PRNGKey(0)
    k_x, k_p = jax.random.split(key)

    input_features = 4
    output_features = 4
    hidden_units = 8
    batch = 8

    x = jax.random.normal(k_x, (batch, input_features), jnp.float32)
    params = init_params(k_p, input_features, output_features, hidden_units)

    packed = pack_params(params)                       # one-time packing (hoisted)
    out = multi_classification_forward(x, packed)
    out = jax.block_until_ready(out)

    ref = reference_forward(x, params)
    assert out.shape == (batch, output_features)
    # bf16 weights/activations with f32 accumulation -> loosened tolerance.
    assert jnp.allclose(out, ref, atol=5e-2, rtol=5e-2)

    print("KERNEL_OK")
</pallas_src>

<mosaic_0001>
module attributes {stable_mosaic.version = 11 : i64} {
  func.func @mlp_packed_kernel(%arg0: i32, %arg1: memref<8x128xf32, #tpu.memory_space<vmem>>, %arg2: memref<128x256xbf16, #tpu.memory_space<vmem>>, %arg3: memref<1x256xf32, #tpu.memory_space<vmem>>, %arg4: memref<256x256xbf16, #tpu.memory_space<vmem>>, %arg5: memref<1x256xf32, #tpu.memory_space<vmem>>, %arg6: memref<256x128xbf16, #tpu.memory_space<vmem>>, %arg7: memref<1x128xf32, #tpu.memory_space<vmem>>, %arg8: memref<8x128xf32, #tpu.memory_space<vmem>>) attributes {dimension_semantics = [#tpu.dimension_semantics<parallel>], iteration_bounds = array<i64: 1>, scalar_prefetch = 0 : i64, scratch_operands = 0 : i64, tpu.core_type = #tpu.core_type<tc>, window_params = [{transform_indices = @transform_0, window_bounds = array<i64: 8, 128>}, {pipeline_mode = #tpu.pipeline_mode<synchronous>, transform_indices = @transform_1, window_bounds = array<i64: 128, 256>}, {pipeline_mode = #tpu.pipeline_mode<synchronous>, transform_indices = @transform_2, window_bounds = array<i64: 1, 256>}, {pipeline_mode = #tpu.pipeline_mode<synchronous>, transform_indices = @transform_3, window_bounds = array<i64: 256, 256>}, {pipeline_mode = #tpu.pipeline_mode<synchronous>, transform_indices = @transform_4, window_bounds = array<i64: 1, 256>}, {pipeline_mode = #tpu.pipeline_mode<synchronous>, transform_indices = @transform_5, window_bounds = array<i64: 256, 128>}, {pipeline_mode = #tpu.pipeline_mode<synchronous>, transform_indices = @transform_6, window_bounds = array<i64: 1, 128>}, {transform_indices = @transform_7, window_bounds = array<i64: 8, 128>}]} {
    %c0 = arith.constant 0 : index
    %c0_0 = arith.constant 0 : index
    %0 = vector.load %arg1[%c0, %c0_0] : memref<8x128xf32, #tpu.memory_space<vmem>>, vector<8x128xf32>
    %1 = arith.truncf %0 : vector<8x128xf32> to vector<8x128xbf16>
    %c0_1 = arith.constant 0 : index
    %c0_2 = arith.constant 0 : index
    %2 = vector.load %arg2[%c0_1, %c0_2] : memref<128x256xbf16, #tpu.memory_space<vmem>>, vector<128x256xbf16>
    %cst = arith.constant dense<0.000000e+00> : vector<8x256xf32>
    %3 = tpu.matmul %1, %2, %cst {dimension_numbers = #tpu.dot_dimension_numbers<[1], [0], [0], [1], [0, 0, 1, 1], [], []>} : vector<8x128xbf16>, vector<128x256xbf16>, vector<8x256xf32> -> vector<8x256xf32>
    %c0_3 = arith.constant 0 : index
    %c0_4 = arith.constant 0 : index
    %4 = vector.load %arg3[%c0_3, %c0_4] : memref<1x256xf32, #tpu.memory_space<vmem>>, vector<1x256xf32>
    %5 = vector.broadcast %4 : vector<1x256xf32> to vector<8x256xf32>
    %6 = arith.addf %3, %5 : vector<8x256xf32>
    %cst_5 = arith.constant 0.000000e+00 : f32
    %7 = vector.broadcast %cst_5 : f32 to vector<8x256xf32>
    %8 = arith.maximumf %6, %7 : vector<8x256xf32>
    %9 = arith.truncf %8 : vector<8x256xf32> to vector<8x256xbf16>
    %c0_6 = arith.constant 0 : index
    %c0_7 = arith.constant 0 : index
    %10 = vector.load %arg4[%c0_6, %c0_7] : memref<256x256xbf16, #tpu.memory_space<vmem>>, vector<256x256xbf16>
    %cst_8 = arith.constant dense<0.000000e+00> : vector<8x256xf32>
    %11 = tpu.matmul %9, %10, %cst_8 {dimension_numbers = #tpu.dot_dimension_numbers<[1], [0], [0], [1], [0, 0, 1, 1], [], []>} : vector<8x256xbf16>, vector<256x256xbf16>, vector<8x256xf32> -> vector<8x256xf32>
    %c0_9 = arith.constant 0 : index
    %c0_10 = arith.constant 0 : index
    %12 = vector.load %arg5[%c0_9, %c0_10] : memref<1x256xf32, #tpu.memory_space<vmem>>, vector<1x256xf32>
    %13 = vector.broadcast %12 : vector<1x256xf32> to vector<8x256xf32>
    %14 = arith.addf %11, %13 : vector<8x256xf32>
    %cst_11 = arith.constant 0.000000e+00 : f32
    %15 = vector.broadcast %cst_11 : f32 to vector<8x256xf32>
    %16 = arith.maximumf %14, %15 : vector<8x256xf32>
    %17 = arith.truncf %16 : vector<8x256xf32> to vector<8x256xbf16>
    %c0_12 = arith.constant 0 : index
    %c0_13 = arith.constant 0 : index
    %18 = vector.load %arg6[%c0_12, %c0_13] : memref<256x128xbf16, #tpu.memory_space<vmem>>, vector<256x128xbf16>
    %cst_14 = arith.constant dense<0.000000e+00> : vector<8x128xf32>
    %19 = tpu.matmul %17, %18, %cst_14 {dimension_numbers = #tpu.dot_dimension_numbers<[1], [0], [0], [1], [0, 0, 1, 1], [], []>} : vector<8x256xbf16>, vector<256x128xbf16>, vector<8x128xf32> -> vector<8x128xf32>
    %c0_15 = arith.constant 0 : index
    %c0_16 = arith.constant 0 : index
    %20 = vector.load %arg7[%c0_15, %c0_16] : memref<1x128xf32, #tpu.memory_space<vmem>>, vector<1x128xf32>
    %21 = vector.broadcast %20 : vector<1x128xf32> to vector<8x128xf32>
    %22 = arith.addf %19, %21 : vector<8x128xf32>
    %c0_17 = arith.constant 0 : index
    %c0_18 = arith.constant 0 : index
    %23 = vector.load %arg8[%c0_17, %c0_18] : memref<8x128xf32, #tpu.memory_space<vmem>>, vector<8x128xf32>
    tpu.vector_store %arg8[%c0_17, %c0_18], %22 {strides = array<i32>} : memref<8x128xf32, #tpu.memory_space<vmem>>, vector<8x128xf32>,
    return
  }
  func.func @transform_0(%arg0: i32) -> (i32, i32) {
    %c0_i32 = arith.constant 0 : i32
    %c0_i32_0 = arith.constant 0 : i32
    return %arg0, %c0_i32 : i32, i32
  }
  func.func @transform_1(%arg0: i32) -> (i32, i32) {
    %c0_i32 = arith.constant 0 : i32
    %c0_i32_0 = arith.constant 0 : i32
    %c0_i32_1 = arith.constant 0 : i32
    return %c0_i32, %c0_i32_0 : i32, i32
  }
  func.func @transform_2(%arg0: i32) -> (i32, i32) {
    %c0_i32 = arith.constant 0 : i32
    %c0_i32_0 = arith.constant 0 : i32
    %c0_i32_1 = arith.constant 0 : i32
    return %c0_i32, %c0_i32_0 : i32, i32
  }
  func.func @transform_3(%arg0: i32) -> (i32, i32) {
    %c0_i32 = arith.constant 0 : i32
    %c0_i32_0 = arith.constant 0 : i32
    %c0_i32_1 = arith.constant 0 : i32
    return %c0_i32, %c0_i32_0 : i32, i32
  }
  func.func @transform_4(%arg0: i32) -> (i32, i32) {
    %c0_i32 = arith.constant 0 : i32
    %c0_i32_0 = arith.constant 0 : i32
    %c0_i32_1 = arith.constant 0 : i32
    return %c0_i32, %c0_i32_0 : i32, i32
  }
  func.func @transform_5(%arg0: i32) -> (i32, i32) {
    %c0_i32 = arith.constant 0 : i32
    %c0_i32_0 = arith.constant 0 : i32
    %c0_i32_1 = arith.constant 0 : i32
    return %c0_i32, %c0_i32_0 : i32, i32
  }
  func.func @transform_6(%arg0: i32) -> (i32, i32) {
    %c0_i32 = arith.constant 0 : i32
    %c0_i32_0 = arith.constant 0 : i32
    %c0_i32_1 = arith.constant 0 : i32
    return %c0_i32, %c0_i32_0 : i32, i32
  }
  func.func @transform_7(%arg0: i32) -> (i32, i32) {
    %c0_i32 = arith.constant 0 : i32
    %c0_i32_0 = arith.constant 0 : i32
    return %arg0, %c0_i32 : i32, i32
  }
}

</mosaic_0001>

<bundles_post_ra>
// kernel: tpu_custom_call.1
= control target key start
LH: loop header
LB: loop body
LE: loop exit
PB: predicated region body
PF: predicated region fallthrough
CT: control target
= control target key end

     0   :  { %12 = vsyncpa [#allocation3], 0  ;;  %s1045_s0 = inlined_call_operand.hbm [shape: f32[8,128], index: 0, kind: input, shape index: {}]   ;;  %s1046_s1 = inlined_call_operand.hbm [shape: bf16[128,256], index: 1, kind: input, shape index: {}]   ;;  %s1047_s2 = inlined_call_operand.vmem [shape: f32[1,256], index: 2, kind: input, shape index: {}]   ;;  %s1048_s3 = inlined_call_operand.hbm [shape: bf16[256,256], index: 3, kind: input, shape index: {}]   ;;  %s1049_s4 = inlined_call_operand.vmem [shape: f32[1,256], index: 4, kind: input, shape index: {}]   ;;  %s1050_s5 = inlined_call_operand.hbm [shape: bf16[256,128], index: 5, kind: input, shape index: {}]   ;;  %s1051_s6 = inlined_call_operand.vmem [shape: f32[1,128], index: 6, kind: input, shape index: {}]   ;;  %s1052_s7 = inlined_call_operand.hbm [shape: f32[8,128], index: 7, kind: output, shape index: {}]  }
   0x1   :  { %13 = vsyncpa [#allocation6], 0 }
   0x2   :  { %14 = vsyncpa [#allocation9], 0 }
   0x3   :  { %15 = vsyncpa [#allocation4], 0  ;;  %s971_s24 = smov [#allocation5]  }
   0x4   :  { %s31_s25 = sshll.u32 %s971_s24, 4  ;;  %s32_s25 = int_to_ptr.vmem [resolvable:$true] %s31_s25 }
   0x5   :  { %s871_s26 = scalar_lea.vmem %s32_s25, 2048  ;;  %p876_p1 = scmp.lt.s32.totalorder %s32_s25, %s32_s25 }
   0x6   :  { %p872_p0 = scmp.ne.s32.totalorder %s32_s25, %s871_s26  ;;  %p877_p2 = scmp.lt.s32.totalorder %s871_s26, %s871_s26 }
   0x8   :  { %p878_p3 = por %p877_p2, %p876_p1 }
   0xa   :  { %p879_p4 = pnand %p878_p3, %p872_p0 }
   0xc   :  { %882 = shalt.err (!%p879_p4)
}
   0xd   :  { %s972_s27 = smov 128   ;;  %s973_s28 = smov 8  }
   0xe   :  { %37 = dma.hbm_to_vmem [thread:$0]  %s1046_s1, 2048, %s32_s25, [#allocation6], %s972_s27, %s972_s27, %s973_s28  }
   0xf   :  { %s974_s8 = smov [#allocation2]   ;;  %s975_s10 = smov [#allocation7]  }
  0x10   :  { %s22_s9 = sshll.u32 %s974_s8, 4  ;;  %s45_s11 = sshll.u32 %s975_s10, 4  ;;  %s23_s9 = int_to_ptr.vmem [resolvable:$true] %s22_s9  ;;  %s46_s11 = int_to_ptr.vmem [resolvable:$true] %s45_s11 }
  0x11   :  { %s891_s12 = scalar_lea.vmem %s23_s9, 128  ;;  %p896_p6 = scmp.lt.s32.totalorder %s23_s9, %s23_s9 }
  0x12   :  { %p892_p5 = scmp.ne.s32.totalorder %s23_s9, %s891_s12  ;;  %p897_p7 = scmp.lt.s32.totalorder %s891_s12, %s891_s12 }
  0x14   :  { %p898_p8 = por %p897_p7, %p896_p6 }
  0x16   :  { %p899_p9 = pnand %p898_p8, %p892_p5 }
  0x18   :  { %902 = shalt.err (!%p899_p9)
}
  0x19   :  { %25 = dma.hbm_to_vmem [thread:$0]  %s1045_s0, 128, %s23_s9, [#allocation3]  }
  0x1a   :  { %s911_s15 = scalar_lea.vmem %s46_s11, 4096  ;;  %p916_p11 = scmp.lt.s32.totalorder %s46_s11, %s46_s11 }
  0x1b   :  { %p912_p10 = scmp.ne.s32.totalorder %s46_s11, %s911_s15  ;;  %p917_p12 = scmp.lt.s32.totalorder %s911_s15, %s911_s15 }
  0x1d   :  { %p918_p13 = por %p917_p12, %p916_p11 }
  0x1f   :  { %p919_p0 = pnand %p918_p13, %p912_p10 }
  0x21   :  { %922 = shalt.err (!%p919_p0)
}
  0x22   :  { %51 = dma.hbm_to_vmem [thread:$0]  %s1048_s3, 4096, %s46_s11, [#allocation6], %s972_s27, %s972_s27, %s973_s28  }
  0x23   :  { %s976_s17 = smov [#allocation8]  }
  0x24   :  { %s59_s18 = sshll.u32 %s976_s17, 4  ;;  %s60_s18 = int_to_ptr.vmem [resolvable:$true] %s59_s18 }
  0x25   :  { %s931_s19 = scalar_lea.vmem %s60_s18, 2048  ;;  %p936_p2 = scmp.lt.s32.totalorder %s60_s18, %s60_s18 }
  0x26   :  { %p932_p1 = scmp.ne.s32.totalorder %s60_s18, %s931_s19  ;;  %p937_p3 = scmp.lt.s32.totalorder %s931_s19, %s931_s19 }
  0x28   :  { %p938_p4 = por %p937_p3, %p936_p2 }
  0x2a   :  { %p939_p5 = pnand %p938_p4, %p932_p1 }
  0x2c   :  { %942 = shalt.err (!%p939_p5)
}
  0x2d   :  { %s977_s0 = smov 64   ;;  %s978_s20 = smov 4  }
  0x2e   :  { %65 = dma.hbm_to_vmem [thread:$0]  %s1050_s5, 2048, %s60_s18, [#allocation9], %s977_s0, %s977_s0, %s978_s20  }
  0x2f   :  { %963 = dma.done.wait [#allocation3], 128  }
  0x30   :  { %964 = vsyncadd [#allocation3], 4294967168 }
  0x31   :  { %965 = dma.done.wait [#allocation6], 6144  }
  0x32   :  { %966 = vsyncadd [#allocation6], 4294961152 }
  0x33   :  { %967 = dma.done.wait [#allocation9], 2048  }
  0x34   :  { %968 = vsyncadd [#allocation9], 4294965248  ;;  %v979_v0 = vmov 0   ;;  %v775_v1 = vld [vmem:[#allocation5 + $0x74] ss:$8 sps:$4 sm:$0xff]   ;;  %v851_v55 = vld [vmem:[#allocation8 + $0x68] sm:$0xff]   ;;  %v101_v63 = vlaneseq }
  0x35   :  { %223 = vmatprep.mubr.bf16.mxu0 %v979_v0  ;;  %v777_v2 = vld [vmem:[#allocation5 + $0x70] ss:$8 sps:$4 sm:$0xff]   ;;  %191 = vmatprep.subr.bf16.mxu0 %v775_v1  ;;  %v778_v3 = vld [vmem:[#allocation5 + $0x64] ss:$8 sps:$4 sm:$0xff]   ;;  %v780_v4 = vld [vmem:[#allocation5 + $0x60] ss:$8 sps:$4 sm:$0xff]  }
  0x36   :  { %192 = vmatpush1.bf16.msra.mxu0 %v777_v2  ;;  %v781_v5 = vld [vmem:[#allocation5 + $0x54] ss:$8 sps:$4 sm:$0xff]   ;;  %v783_v6 = vld [vmem:[#allocation5 + $0x50] ss:$8 sps:$4 sm:$0xff]   ;;  %v784_v7 = vld [vmem:[#allocation5 + $0x44] ss:$8 sps:$4 sm:$0xff]  }
  0x37   :  { %193 = vmatprep.subr.bf16.mxu0 %v778_v3  ;;  %v786_v8 = vld [vmem:[#allocation5 + $0x40] ss:$8 sps:$4 sm:$0xff]   ;;  %v787_v9 = vld [vmem:[#allocation5 + $0x34] ss:$8 sps:$4 sm:$0xff]   ;;  %v801_v11 = vld [vmem:[#allocation7 + $0x70] ss:$8 sps:$4 sm:$0xff]  }
  0x38   :  { %v799_v10 = vld [vmem:[#allocation7 + $0x74] ss:$8 sps:$4 sm:$0xff]   ;;  %v802_v12 = vld [vmem:[#allocation7 + $0x64] ss:$8 sps:$4 sm:$0xff]   ;;  %v789_v13 = vld [vmem:[#allocation5 + $0x30] ss:$8 sps:$4 sm:$0xff]  }
  0x39   :  { %440 = vmatprep.subr.bf16.mxu1 %v799_v10  ;;  %v804_v14 = vld [vmem:[#allocation7 + $0x60] ss:$8 sps:$4 sm:$0xff]   ;;  %v805_v15 = vld [vmem:[#allocation7 + $0x54] ss:$8 sps:$4 sm:$0xff]   ;;  %v790_v16 = vld [vmem:[#allocation5 + $0x24] ss:$8 sps:$4 sm:$0xff]  }
  0x3a   :  { %194 = vmatpush1.bf16.msra.mxu0 %v780_v4  ;;  %441 = vmatpush1.bf16.msra.mxu1 %v801_v11  ;;  %v792_v17 = vld [vmem:[#allocation5 + $0x20] ss:$8 sps:$4 sm:$0xff]   ;;  %v807_v18 = vld [vmem:[#allocation7 + $0x50] ss:$8 sps:$4 sm:$0xff]   ;;  %v808_v19 = vld [vmem:[#allocation7 + $0x44] ss:$8 sps:$4 sm:$0xff]  }
  0x3b   :  { %195 = vmatprep.subr.bf16.mxu0 %v781_v5  ;;  %442 = vmatprep.subr.bf16.mxu1 %v802_v12  ;;  %v793_v20 = vld [vmem:[#allocation5 + $0x14] ss:$8 sps:$4 sm:$0xff]   ;;  %v795_v21 = vld [vmem:[#allocation5 + $0x10] ss:$8 sps:$4 sm:$0xff]   ;;  %v810_v22 = vld [vmem:[#allocation7 + $0x40] ss:$8 sps:$4 sm:$0xff]  }
  0x3c   :  { %v811_v23 = vld [vmem:[#allocation7 + $0x34] ss:$8 sps:$4 sm:$0xff]   ;;  %v796_v24 = vld [vmem:[#allocation5 + $0x4] ss:$8 sps:$4 sm:$0xff]   ;;  %v798_v25 = vld [vmem:[#allocation5] ss:$8 sps:$4 sm:$0xff]  }
  0x3d   :  { %v81_v26 = vld [vmem:[#allocation2] sm:$0xff]  ;;  %v814_v28 = vld [vmem:[#allocation7 + $0x24] ss:$8 sps:$4 sm:$0xff]   ;;  %v816_v29 = vld [vmem:[#allocation7 + $0x20] ss:$8 sps:$4 sm:$0xff]   ;;  %v102_v0 = vshrl.u32 %v101_v63, 7 }
  0x3e   :  { %196 = vmatpush1.bf16.msra.mxu0 %v783_v6  ;;  %443 = vmatpush1.bf16.msra.mxu1 %v804_v14  ;;  %v813_v27 = vld [vmem:[#allocation7 + $0x30] ss:$8 sps:$4 sm:$0xff]   ;;  %v817_v30 = vld [vmem:[#allocation7 + $0x14] ss:$8 sps:$4 sm:$0xff]   ;;  %v82_v31 = vpack.c.bf16 %v81_v26, %v81_v26  ;;  %v820_v33 = vld [vmem:[#allocation7 + $0x4] ss:$8 sps:$4 sm:$0xff]  }
  0x3f   :  { %197 = vmatprep.subr.bf16.mxu0 %v784_v7  ;;  %444 = vmatprep.subr.bf16.mxu1 %v805_v15  ;;  %v819_v32 = vld [vmem:[#allocation7 + $0x10] ss:$8 sps:$4 sm:$0xff]   ;;  %v822_v34 = vld [vmem:[#allocation7] ss:$8 sps:$4 sm:$0xff]   ;;  %v823_v35 = vld [vmem:[#allocation7 + $0xf4] ss:$8 sps:$4 sm:$0xff]  }
  0x40   :  { %v825_v36 = vld [vmem:[#allocation7 + $0xf0] ss:$8 sps:$4 sm:$0xff]   ;;  %v826_v37 = vld [vmem:[#allocation7 + $0xe4] ss:$8 sps:$4 sm:$0xff]   ;;  %v828_v38 = vld [vmem:[#allocation7 + $0xe0] ss:$8 sps:$4 sm:$0xff]  }
  0x41   :  { %v829_v39 = vld [vmem:[#allocation7 + $0xd4] ss:$8 sps:$4 sm:$0xff]   ;;  %v831_v40 = vld [vmem:[#allocation7 + $0xd0] ss:$8 sps:$4 sm:$0xff]   ;;  %v832_v41 = vld [vmem:[#allocation7 + $0xc4] ss:$8 sps:$4 sm:$0xff]  }
  0x42   :  { %198 = vmatpush1.bf16.msra.mxu0 %v786_v8  ;;  %445 = vmatpush1.bf16.msra.mxu1 %v807_v18  ;;  %v834_v42 = vld [vmem:[#allocation7 + $0xc0] ss:$8 sps:$4 sm:$0xff]   ;;  %v835_v43 = vld [vmem:[#allocation7 + $0xb4] ss:$8 sps:$4 sm:$0xff]   ;;  %v837_v44 = vld [vmem:[#allocation7 + $0xb0] ss:$8 sps:$4 sm:$0xff]  }
  0x43   :  { %199 = vmatprep.subr.bf16.mxu0 %v787_v9  ;;  %446 = vmatprep.subr.bf16.mxu1 %v808_v19  ;;  %v838_v45 = vld [vmem:[#allocation7 + $0xa4] ss:$8 sps:$4 sm:$0xff]   ;;  %v840_v46 = vld [vmem:[#allocation7 + $0xa0] ss:$8 sps:$4 sm:$0xff]   ;;  %v841_v47 = vld [vmem:[#allocation7 + $0x94] ss:$8 sps:$4 sm:$0xff]  }
  0x44   :  { %v843_v48 = vld [vmem:[#allocation7 + $0x90] ss:$8 sps:$4 sm:$0xff]   ;;  %v844_v49 = vld [vmem:[#allocation7 + $0x84] ss:$8 sps:$4 sm:$0xff]   ;;  %v846_v50 = vld [vmem:[#allocation7 + $0x80] ss:$8 sps:$4 sm:$0xff]  }
  0x45   :  { %v847_v51 = vld [vmem:[#allocation8 + $0x78] sm:$0xff]   ;;  %v849_v53 = vld [vmem:[#allocation8 + $0x70] sm:$0xff]   ;;  %v852_v56 = vld [vmem:[#allocation8 + $0x28] sm:$0xff]   ;;  %v103_v1 = vsub.s32 0, %v102_v0  ;;  %v107_v3 = vsub.s32 1, %v102_v0 }
  0x46   :  { %200 = vmatpush1.bf16.msra.mxu0 %v789_v13  ;;  %447 = vmatpush1.bf16.msra.mxu1 %v810_v22  ;;  %v848_v52 = vld [vmem:[#allocation8 + $0x38] sm:$0xff]   ;;  %v850_v54 = vld [vmem:[#allocation8 + $0x30] sm:$0xff]   ;;  %v853_v57 = vld [vmem:[#allocation8 + $0x60] sm:$0xff]  }
  0x47   :  { %201 = vmatprep.subr.bf16.mxu0 %v790_v16  ;;  %448 = vmatprep.subr.bf16.mxu1 %v811_v23  ;;  %v854_v58 = vld [vmem:[#allocation8 + $0x20] sm:$0xff]   ;;  %v855_v59 = vld [vmem:[#allocation8 + $0x58] sm:$0xff]   ;;  %v857_v61 = vld [vmem:[#allocation8 + $0x50] sm:$0xff]  }
  0x48   :  { %v856_v60 = vld [vmem:[#allocation8 + $0x18] sm:$0xff]   ;;  %v858_v62 = vld [vmem:[#allocation8 + $0x10] sm:$0xff]   ;;  %v859_v16 = vld [vmem:[#allocation8 + $0x48] sm:$0xff]  }
  0x49   :  { %v99_v2 = vld [vmem:[%s1047_s2] sm:$0x3]  ;;  %v861_v18 = vld [vmem:[#allocation8 + $0x40] sm:$0xff]  }
  0x4a   :  { %202 = vmatpush1.bf16.msra.mxu0 %v792_v17  ;;  %449 = vmatpush1.bf16.msra.mxu1 %v813_v27  ;;  %v104_v4 = vrot.slane %v99_v2, %v103_v1  ;;  %v108_v5 = vrot.slane %v99_v2, %v107_v3  ;;  %v860_v17 = vld [vmem:[#allocation8 + $0x8] sm:$0xff]   ;;  %v862_v19 = vld [vmem:[#allocation8] sm:$0xff]  }
  0x4b   :  { %203 = vmatprep.subr.bf16.mxu0 %v793_v20  ;;  %450 = vmatprep.subr.bf16.mxu1 %v814_v28  ;;  %v268_v20 = vld [vmem:[%s1049_s4] sm:$0x3]  ;;  %s980_s4 = smov [#allocation10]  }
  0x4c   :  { %v277_v22 = vrot.slane %v268_v20, %v107_v3  ;;  %s667_s26 = sshll.u32 %s980_s4, 4  ;;  %s668_s26 = int_to_ptr.vmem [resolvable:$true] %s667_s26 }
  0x4d   :  { %s943_s27 = scalar_lea.vmem %s668_s26, 128  ;;  %p948_p7 = scmp.lt.s32.totalorder %s668_s26, %s668_s26 }
  0x4e   :  { %204 = vmatpush1.bf16.msra.mxu0 %v795_v21  ;;  %451 = vmatpush1.bf16.msra.mxu1 %v816_v29  ;;  %v273_v21 = vrot.slane %v268_v20, %v103_v1  ;;  %p944_p6 = scmp.ne.s32.totalorder %s668_s26, %s943_s27  ;;  %p949_p8 = scmp.lt.s32.totalorder %s943_s27, %s943_s27 }
  0x4f   :  { %205 = vmatprep.subr.bf16.mxu0 %v796_v24  ;;  %452 = vmatprep.subr.bf16.mxu1 %v817_v30 }
  0x50   :  { %p950_p9 = por %p949_p8, %p948_p7 }
  0x52   :  { %206 = vmatpush1.bf16.msra.mxu0 %v798_v25  ;;  %453 = vmatpush1.bf16.msra.mxu1 %v819_v32  ;;  %p951_p10 = pnand %p950_p9, %p944_p6 }
  0x53   :  { %454 = vmatprep.subr.bf16.mxu1 %v820_v33  ;;  %743 = vmatprep.subr.bf16.mxu0 %v847_v51 }
  0x55   :  { %224 = vmatmul.mubr.bf16.vlgmr.msra.gmra.mxu0 %v82_v31 }
  0x56   :  { %455 = vmatpush1.bf16.msra.mxu1 %v822_v34  ;;  %744 = vmatpush3.bf16.msra.mxu0 %v848_v52  ;;  %v726_v34 = vld [vmem:[%s1051_s6] ss:$0 sm:$0xff] }
  0x57   :  { %456 = vmatprep.subr.bf16.mxu1 %v823_v35  ;;  %745 = vmatprep.subr.bf16.mxu0 %v849_v53 }
  0x5a   :  { %457 = vmatpush2.bf16.msra.mxu1 %v825_v36  ;;  %746 = vmatpush3.bf16.msra.mxu0 %v850_v54 }
  0x5b   :  { %458 = vmatprep.subr.bf16.mxu1 %v826_v37  ;;  %747 = vmatprep.subr.bf16.mxu0 %v851_v55 }
  0x5e   :  { %459 = vmatpush2.bf16.msra.mxu1 %v828_v38  ;;  %748 = vmatpush3.bf16.msra.mxu0 %v852_v56 }
  0x5f   :  { %460 = vmatprep.subr.bf16.mxu1 %v829_v39  ;;  %749 = vmatprep.subr.bf16.mxu0 %v853_v57 }
  0x62   :  { %461 = vmatpush2.bf16.msra.mxu1 %v831_v40  ;;  %750 = vmatpush3.bf16.msra.mxu0 %v854_v58 }
  0x63   :  { %462 = vmatprep.subr.bf16.mxu1 %v832_v41  ;;  %751 = vmatprep.subr.bf16.mxu0 %v855_v59 }
  0x66   :  { %463 = vmatpush2.bf16.msra.mxu1 %v834_v42  ;;  %752 = vmatpush3.bf16.msra.mxu0 %v856_v60 }
  0x67   :  { %464 = vmatprep.subr.bf16.mxu1 %v835_v43  ;;  %753 = vmatprep.subr.bf16.mxu0 %v857_v61 }
  0x6a   :  { %465 = vmatpush2.bf16.msra.mxu1 %v837_v44  ;;  %754 = vmatpush3.bf16.msra.mxu0 %v858_v62 }
  0x6b   :  { %466 = vmatprep.subr.bf16.mxu1 %v838_v45  ;;  %755 = vmatprep.subr.bf16.mxu0 %v859_v16 }
  0x6e   :  { %467 = vmatpush2.bf16.msra.mxu1 %v840_v46  ;;  %756 = vmatpush3.bf16.msra.mxu0 %v860_v17 }
  0x6f   :  { %468 = vmatprep.subr.bf16.mxu1 %v841_v47  ;;  %757 = vmatprep.subr.bf16.mxu0 %v861_v18 }
  0x72   :  { %469 = vmatpush2.bf16.msra.mxu1 %v843_v48  ;;  %758 = vmatpush3.bf16.msra.mxu0 %v862_v19 }
  0x73   :  { %470 = vmatprep.subr.bf16.mxu1 %v844_v49 }
  0x76   :  { %471 = vmatpush2.bf16.msra.mxu1 %v846_v50 }
 0x115   :  { %v225_v6 = vpop.f32.mrf.mxu0 }
 0x116   :  { %v226_v7 = vadd.f32 %v225_v6, %v104_v4 }
 0x117   :  { %v227_v8 = vpop.f32.mrf.mxu0 }
 0x118   :  { %v228_v9 = vadd.f32 %v227_v8, %v108_v5  ;;  %v232_v10 = vmax.f32 %v226_v7, 0.0 }
 0x119   :  { %v229_v11 = vpop.f32.mrf.mxu0 }
 0x11a   :  { %v233_v12 = vmax.f32 %v228_v9, 0.0  ;;  %v234_v15 = vpack.c.bf16 %v232_v10, %v232_v10 }
 0x11b   :  { %v230_v13 = vpop.f32.mrf.mxu0 }
 0x11c   :  { %v235_v14 = vpack.c.bf16 %v233_v12, %v233_v12 }
 0x11e   :  { %472 = vmatprep.mubr.bf16.mxu1 %v235_v14 }
 0x11f   :  { %473 = vmatmul.mubr.bf16.vlgmr.msra.gmra.mxu1 %v234_v15 }
 0x1df   :  { %v474_v23 = vpop.f32.mrf.mxu1 }
 0x1e0   :  { %v475_v24 = vadd.f32 %v474_v23, %v273_v21 }
 0x1e1   :  { %v476_v25 = vpop.f32.mrf.mxu1 }
 0x1e2   :  { %v477_v26 = vadd.f32 %v476_v25, %v277_v22  ;;  %v481_v27 = vmax.f32 %v475_v24, 0.0 }
 0x1e3   :  { %v478_v28 = vpop.f32.mrf.mxu1 }
 0x1e4   :  { %v482_v29 = vmax.f32 %v477_v26, 0.0  ;;  %v483_v32 = vpack.c.bf16 %v481_v27, %v481_v27 }
 0x1e5   :  { %v479_v30 = vpop.f32.mrf.mxu1 }
 0x1e6   :  { %v484_v31 = vpack.c.bf16 %v482_v29, %v482_v29 }
 0x1e8   :  { %652 = vmatprep.mubr.bf16.mxu0 %v484_v31 }
 0x1e9   :  { %653 = vmatmul.mubr.bf16.vlgmr.msra.gmra.mxu0 %v483_v32 }
 0x2a9   :  { %v759_v33 = vpop.f32.mrf.mxu0 }
 0x2ab   :  { %v760_v35 = vpop.f32.mrf.mxu0 }
 0x2ac   :  { %v761_v36 = vadd.f32 %v760_v35, %v759_v33 }
 0x2ad   :  { %v762_v37 = vpop.f32.mrf.mxu0 }
 0x2ae   :  { %v655_v38 = vadd.f32 %v761_v36, %v726_v34 }
 0x2af   :  { %v763_v39 = vpop.f32.mrf.mxu0 }
 0x2b0   :  { %660 = vst [vmem:[#allocation10] sm:$0xff] %v655_v38 }
 0x2b1   :  { %954 = shalt.err (!%p951_p10)
}
 0x2b2   :  { %670 = dma.vmem_to_hbm [thread:$0]  %s668_s26, 128, %s1052_s7, [#allocation4]  }
 0x2b3   :  { %969 = dma.done.wait [#allocation4], 128  }
 0x2b4   :  { %970 = vsyncadd [#allocation4], 4294967168 }
 0x2b5   :  { %674 = vsyncpa [#allocation3], 1 }
 0x2b6   :  { %675 = vsyncpa [#allocation6], 1 }
 0x2b7   :  { %676 = vsyncpa [#allocation9], 1 }
 0x2b8   :  { %677 = vsyncpa [#allocation4], 1 }

</bundles_post_ra>
